<compile_context>
chip_gen: v5e
topology: v5e:2x2
jax: 0.10.0
libtpu: 0.0.40
codegen_flags: <defaults>
</compile_context>

<pallas_src>
import jax
import jax.numpy as jnp
from jax.experimental import pallas as pl
from jax.experimental.pallas import tpu as pltpu


_LANE_CANDIDATES = (1024, 512, 256, 128)   # prefer wide, unmasked lane layout
_SMALL_BYTES = 1 << 20                      # <= 1 MiB: single-block VMEM copy
_CHUNK_TARGET_BYTES = 8 << 20               # ~8 MiB per HBM->HBM DMA chunk


def _lane_dense_view(n_elem: int):
    """Pick a (rows, lanes) 2D view with lanes a multiple of 128 if possible."""
    for lanes in _LANE_CANDIDATES:
        if n_elem % lanes == 0:
            return n_elem // lanes, lanes
    # Only reached on the small path (full-extent block, exempt from (8,128)).
    return 1, n_elem


# ----------------------------------------------------------------------------
# Small path: one full-extent block, trivial grid, VMEM copy.
# ----------------------------------------------------------------------------
def _copy_tile_kernel(x_ref, o_ref):
    o_ref[...] = x_ref[...]


def _small_copy(x2d: jax.Array) -> jax.Array:
    rows, lanes = x2d.shape
    nbytes = x2d.size * x2d.dtype.itemsize
    return pl.pallas_call(
        _copy_tile_kernel,
        out_shape=jax.ShapeDtypeStruct((rows, lanes), x2d.dtype),
        grid_spec=pltpu.PrefetchScalarGridSpec(
            num_scalar_prefetch=0,
            grid=(1,),
            in_specs=[pl.BlockSpec((rows, lanes), lambda i: (0, 0))],
            out_specs=pl.BlockSpec((rows, lanes), lambda i: (0, 0)),
        ),
        compiler_params=pltpu.CompilerParams(
            dimension_semantics=("arbitrary",),
        ),
        cost_estimate=pl.CostEstimate(
            flops=0, transcendentals=0, bytes_accessed=2 * nbytes),
    )(x2d)


# ----------------------------------------------------------------------------
# Large path: chunked HBM -> HBM DMA, 2 outstanding copies, no VMEM staging.
# ----------------------------------------------------------------------------
def _large_copy(x2d: jax.Array) -> jax.Array:
    rows, lanes = x2d.shape
    itemsize = x2d.dtype.itemsize
    nbytes = rows * lanes * itemsize

    # Chunk size expressed in bytes (~8 MiB), rounded down to 8 rows.
    row_bytes = lanes * itemsize
    chunk_rows = max(8, (_CHUNK_TARGET_BYTES // row_bytes) // 8 * 8)
    chunk_rows = min(chunk_rows, rows)
    chunks = [(r0, min(chunk_rows, rows - r0))
              for r0 in range(0, rows, chunk_rows)]

    def kernel(x_hbm, o_hbm, sem):
        # Static Python loop: issue chunked HBM->HBM DMAs with 2 outstanding.
        descs = []
        for idx, (r0, nr) in enumerate(chunks):
            d = pltpu.make_async_copy(
                x_hbm.at[pl.ds(r0, nr), :],
                o_hbm.at[pl.ds(r0, nr), :],
                sem.at[idx % 2],
            )
            if idx >= 2:
                descs[idx - 2].wait()   # free this slot before reusing it
            d.start()
            descs.append(d)
        for d in descs[-2:]:
            d.wait()

    return pl.pallas_call(
        kernel,
        out_shape=jax.ShapeDtypeStruct((rows, lanes), x2d.dtype),
        in_specs=[pl.BlockSpec(memory_space=pl.ANY)],
        out_specs=pl.BlockSpec(memory_space=pl.ANY),
        scratch_shapes=[pltpu.SemaphoreType.DMA((2,))],
        compiler_params=pltpu.CompilerParams(has_side_effects=True),
        cost_estimate=pl.CostEstimate(
            flops=0, transcendentals=0, bytes_accessed=2 * nbytes),
    )(x2d)


def pallas_passthrough(x: jax.Array, *, copy: bool = True) -> jax.Array:
    """Identity on TPU.

    copy=False (production): return x unchanged — zero HBM traffic, the
    correct "optimization" for a true identity.
    copy=True (demo/validation): materialize a copy via Pallas.  Small tensors
    use a single full-extent VMEM block; large tensors use a chunked
    HBM->HBM DMA kernel that never stages data in VMEM.
    """
    if not copy or x.size == 0:
        return x

    n_elem = x.size
    nbytes = n_elem * x.dtype.itemsize

    if nbytes <= _SMALL_BYTES:
        rows, lanes = _lane_dense_view(n_elem)
        return _small_copy(x.reshape(rows, lanes)).reshape(x.shape)

    if n_elem % 128 != 0:
        # Pad to a multiple of 1024 so the copy stays lane-dense, then slice.
        padded = -(-n_elem // 1024) * 1024
        flat = jnp.pad(x.reshape(-1), (0, padded - n_elem))
        out2d = _large_copy(flat.reshape(padded // 1024, 1024))
        return out2d.reshape(-1)[:n_elem].reshape(x.shape)

    rows, lanes = _lane_dense_view(n_elem)
    return _large_copy(x.reshape(rows, lanes)).reshape(x.shape)


# ----------------------------------------------------------------------------
# BaseDecoder: exact dispatch semantics of the PyTorch module.
# ----------------------------------------------------------------------------
class BaseDecoder:
    """JAX mirror of openrec BaseDecoder (no parameters, pure dispatch)."""

    def __init__(self, **kwargs):
        pass

    # TODO(synk): abstract in the reference module — concrete decoders
    # (e.g. RobustScanner's position / sequence attention heads) override these.
    def forward_train(self, feat, out_enc, targets, img_metas, word_positions):
        raise NotImplementedError

    def forward_test(self, feat, out_enc, img_metas, word_positions):
        raise NotImplementedError

    def forward(self, feat, out_enc, label=None, valid_ratios=None,
                word_positions=None, train_mode=True):
        self.train_mode = train_mode
        if train_mode:
            return self.forward_train(feat, out_enc, label, valid_ratios,
                                      word_positions)
        return self.forward_test(feat, out_enc, valid_ratios, word_positions)

    __call__ = forward


class PassthroughDecoder(BaseDecoder):
    """Minimal concrete child used only to drive the Pallas kernel in the demo.

    Both branches return out_enc routed through the Pallas identity kernel —
    no invented math beyond what BaseDecoder's dispatch implies.  In production
    the fastest path is `return out_enc` (pallas_passthrough(..., copy=False)).
    """

    def forward_train(self, feat, out_enc, targets, img_metas, word_positions):
        return pallas_passthrough(out_enc, copy=True)

    def forward_test(self, feat, out_enc, img_metas, word_positions):
        return pallas_passthrough(out_enc, copy=True)


# ----------------------------------------------------------------------------
# Demo
# ----------------------------------------------------------------------------
if __name__ == "__main__":
    key = jax.random.PRNGKey(0)
    k_feat, k_enc, k_lab, k_big, k_odd = jax.random.split(key, 5)

    N, C, H, W = 2, 4, 16, 16           # feat: NCHW (PyTorch convention)
    C_enc = 32                          # encoder channels
    T = 8                               # sequence length

    feat = jax.random.normal(k_feat, (N, C, H, W), dtype=jnp.float32)
    out_enc = jax.random.normal(k_enc, (N, C_enc, H, W), dtype=jnp.float32)
    label = jax.random.randint(k_lab, (N, T), 0, 37, dtype=jnp.int32)
    valid_ratios = jnp.ones((N,), dtype=jnp.float32)
    word_positions = jnp.tile(jnp.arange(T, dtype=jnp.int32)[None, :], (N, 1))

    # 1) Base class dispatch semantics: forward_train / forward_test raise.
    base = BaseDecoder()
    try:
        base(feat, out_enc, label, valid_ratios, word_positions,
             train_mode=True)
        raise AssertionError("BaseDecoder.forward_train should raise")
    except NotImplementedError:
        pass
    try:
        base(feat, out_enc, label, valid_ratios, word_positions,
             train_mode=False)
        raise AssertionError("BaseDecoder.forward_test should raise")
    except NotImplementedError:
        pass
    assert base.train_mode is False  # forward() set the flag before dispatch

    # 2) Concrete child exercises the small-path Pallas kernel via dispatch.
    dec = PassthroughDecoder()
    out_train = dec(feat, out_enc, label, valid_ratios, word_positions,
                    train_mode=True)
    out_test = dec(feat, out_enc, None, valid_ratios, word_positions,
                   train_mode=False)
    jax.block_until_ready((out_train, out_test))
    assert out_train.shape == out_enc.shape and out_train.dtype == out_enc.dtype
    assert jnp.allclose(out_train, out_enc)
    assert jnp.allclose(out_test, out_enc)

    # 3) Production fast path: identity with zero HBM traffic.
    assert pallas_passthrough(out_enc, copy=False) is out_enc

    # 4) Large lane-dense tensor -> chunked HBM->HBM DMA path (two ~8 MiB chunks).
    big = jax.random.normal(k_big, (8, 64, 64, 128), dtype=jnp.float32)  # 16 MiB
    big_out = pallas_passthrough(big)
    jax.block_until_ready(big_out)
    assert jnp.array_equal(big_out, big)

    # 5) Large non-128-divisible tensor -> padded lane-dense DMA path.
    odd = jax.random.normal(k_odd, (1111, 1111), dtype=jnp.float32)  # ~4.7 MiB
    odd_out = pallas_passthrough(odd)
    jax.block_until_ready(odd_out)
    assert jnp.array_equal(odd_out, odd)

    print("KERNEL_OK")
</pallas_src>

<mosaic_0001>
module attributes {stable_mosaic.version = 11 : i64} {
  func.func @_copy_tile_kernel(%arg0: i32, %arg1: memref<16x1024xf32, #tpu.memory_space<vmem>>, %arg2: memref<16x1024xf32, #tpu.memory_space<vmem>>) attributes {dimension_semantics = [#tpu.dimension_semantics<arbitrary>], iteration_bounds = array<i64: 1>, scalar_prefetch = 0 : i64, scratch_operands = 0 : i64, tpu.core_type = #tpu.core_type<tc>, window_params = [{pipeline_mode = #tpu.pipeline_mode<synchronous>, transform_indices = @transform_0, window_bounds = array<i64: 16, 1024>}, {pipeline_mode = #tpu.pipeline_mode<synchronous>, transform_indices = @transform_1, window_bounds = array<i64: 16, 1024>}]} {
    %c0 = arith.constant 0 : index
    %c0_0 = arith.constant 0 : index
    %0 = vector.load %arg1[%c0, %c0_0] : memref<16x1024xf32, #tpu.memory_space<vmem>>, vector<16x1024xf32>
    %c0_1 = arith.constant 0 : index
    %c0_2 = arith.constant 0 : index
    %1 = vector.load %arg2[%c0_1, %c0_2] : memref<16x1024xf32, #tpu.memory_space<vmem>>, vector<16x1024xf32>
    tpu.vector_store %arg2[%c0_1, %c0_2], %0 {strides = array<i32>} : memref<16x1024xf32, #tpu.memory_space<vmem>>, vector<16x1024xf32>,
    return
  }
  func.func @transform_0(%arg0: i32) -> (i32, i32) {
    %c0_i32 = arith.constant 0 : i32
    %c0_i32_0 = arith.constant 0 : i32
    %c0_i32_1 = arith.constant 0 : i32
    return %c0_i32, %c0_i32_0 : i32, i32
  }
  func.func @transform_1(%arg0: i32) -> (i32, i32) {
    %c0_i32 = arith.constant 0 : i32
    %c0_i32_0 = arith.constant 0 : i32
    %c0_i32_1 = arith.constant 0 : i32
    return %c0_i32, %c0_i32_0 : i32, i32
  }
}

</mosaic_0001>

<bundles_post_ra>
// kernel: tpu_custom_call.1
= control target key start
LH: loop header
LB: loop body
LE: loop exit
PB: predicated region body
PF: predicated region fallthrough
CT: control target
= control target key end

     0   :  { %6 = vsyncpa [#allocation3], 0  ;;  %s158_s0 = inlined_call_operand.hbm [shape: f32[16,1024], index: 0, kind: input, shape index: {}]   ;;  %s159_s1 = inlined_call_operand.hbm [shape: f32[16,1024], index: 1, kind: output, shape index: {}]  }
   0x1   :  { %7 = vsyncpa [#allocation4], 0  ;;  %s12_s8 = sshll.u32 %s158_s0, 4  ;;  %s132_s9 = smov [#allocation2]   ;;  %s13_s8 = int_to_ptr.hbm [resolvable:$true] %s12_s8 }
   0x2   :  { %s14_s10 = sshll.u32 %s132_s9, 4  ;;  %s133_s11 = smov 1024   ;;  %s15_s10 = int_to_ptr.vmem [resolvable:$true] %s14_s10 }
   0x3   :  { %s134_s12 = smov 64  }
   0x4   :  { %20 = dma.hbm_to_vmem [thread:$0]  %s13_s8, 2048, %s15_s10, [#allocation3], %s133_s11, %s133_s11, %s134_s12  }
   0x5   :  { %128 = dma.done.wait [#allocation3], 2048  }
   0x6   :  { %129 = vsyncadd [#allocation3], 4294965248  ;;  %v25_v0 = vld [vmem:[#allocation2] sm:$0xff]  ;;  %v26_v1 = vld [vmem:[#allocation2 + $0x8] sm:$0xff]  ;;  %s135_s0 = smov [#allocation5]   ;;  %s63_s16 = sshll.u32 %s159_s1, 4  ;;  %s64_s16 = int_to_ptr.hbm [resolvable:$true] %s63_s16 }
   0x7   :  { %v27_v2 = vld [vmem:[#allocation2 + $0x10] sm:$0xff]  ;;  %41 = vst [vmem:[#allocation5] sm:$0xff] %v25_v0  ;;  %v28_v3 = vld [vmem:[#allocation2 + $0x18] sm:$0xff]  ;;  %v29_v4 = vld [vmem:[#allocation2 + $0x20] sm:$0xff]  ;;  %s61_s13 = sshll.u32 %s135_s0, 4  ;;  %s62_s13 = int_to_ptr.vmem [resolvable:$true] %s61_s13 }
   0x8   :  { %42 = vst [vmem:[#allocation5 + $0x8] sm:$0xff] %v26_v1  ;;  %v30_v5 = vld [vmem:[#allocation2 + $0x28] sm:$0xff]  ;;  %v31_v6 = vld [vmem:[#allocation2 + $0x30] sm:$0xff]  ;;  %v32_v7 = vld [vmem:[#allocation2 + $0x38] sm:$0xff] }
   0x9   :  { %43 = vst [vmem:[#allocation5 + $0x10] sm:$0xff] %v27_v2  ;;  %v33_v8 = vld [vmem:[#allocation2 + $0x40] sm:$0xff]  ;;  %v34_v9 = vld [vmem:[#allocation2 + $0x48] sm:$0xff]  ;;  %v35_v10 = vld [vmem:[#allocation2 + $0x50] sm:$0xff] }
   0xa   :  { %44 = vst [vmem:[#allocation5 + $0x18] sm:$0xff] %v28_v3  ;;  %v36_v11 = vld [vmem:[#allocation2 + $0x58] sm:$0xff]  ;;  %v37_v12 = vld [vmem:[#allocation2 + $0x60] sm:$0xff]  ;;  %v38_v13 = vld [vmem:[#allocation2 + $0x68] sm:$0xff] }
   0xb   :  { %45 = vst [vmem:[#allocation5 + $0x20] sm:$0xff] %v29_v4  ;;  %v39_v14 = vld [vmem:[#allocation2 + $0x70] sm:$0xff]  ;;  %v40_v15 = vld [vmem:[#allocation2 + $0x78] sm:$0xff] }
   0xc   :  { %46 = vst [vmem:[#allocation5 + $0x28] sm:$0xff] %v30_v5 }
   0xd   :  { %47 = vst [vmem:[#allocation5 + $0x30] sm:$0xff] %v31_v6 }
   0xe   :  { %48 = vst [vmem:[#allocation5 + $0x38] sm:$0xff] %v32_v7 }
   0xf   :  { %49 = vst [vmem:[#allocation5 + $0x40] sm:$0xff] %v33_v8 }
  0x10   :  { %50 = vst [vmem:[#allocation5 + $0x48] sm:$0xff] %v34_v9 }
  0x11   :  { %51 = vst [vmem:[#allocation5 + $0x50] sm:$0xff] %v35_v10 }
  0x12   :  { %52 = vst [vmem:[#allocation5 + $0x58] sm:$0xff] %v36_v11 }
  0x13   :  { %53 = vst [vmem:[#allocation5 + $0x60] sm:$0xff] %v37_v12 }
  0x14   :  { %54 = vst [vmem:[#allocation5 + $0x68] sm:$0xff] %v38_v13 }
  0x15   :  { %55 = vst [vmem:[#allocation5 + $0x70] sm:$0xff] %v39_v14 }
  0x16   :  { %56 = vst [vmem:[#allocation5 + $0x78] sm:$0xff] %v40_v15 }
  0x17   :  { %69 = dma.vmem_to_hbm [thread:$0]  %s62_s13, 2048, %s64_s16, [#allocation4], %s133_s11, %s133_s11, %s134_s12  }
  0x18   :  { %130 = dma.done.wait [#allocation4], 2048  }
  0x19   :  { %131 = vsyncadd [#allocation4], 4294965248 }
  0x1a   :  { %74 = vsyncpa [#allocation3], 1 }
  0x1b   :  { %75 = vsyncpa [#allocation4], 1 }

</bundles_post_ra>
